<compile_context>
chip_gen: v7x
topology: tpu7x:2x2x1
jax: 0.10.0
libtpu: 0.0.40
codegen_flags: <defaults>
</compile_context>

<pallas_src>
import functools
import math

import jax
import jax.numpy as jnp
from jax.experimental import pallas as pl
from jax.experimental.pallas import tpu as pltpu


def _round_up(x, m):
    return (x + m - 1) // m * m


# ----------------------------------------------------------------------------
# Pallas GEMM kernels: out = [relu](A @ W + shift [+ residual]), bf16 out,
# f32 accumulation and epilogue.  Operands are pre-packed bf16, N lane-dense.
# ----------------------------------------------------------------------------
def _gemm_kernel(a_ref, w_ref, b_ref, o_ref, *, relu):
    acc = jnp.dot(a_ref[...], w_ref[...], preferred_element_type=jnp.float32)
    acc = acc + b_ref[...]
    if relu:
        acc = jnp.maximum(acc, 0.0)
    o_ref[...] = acc.astype(o_ref.dtype)


def _gemm_res_kernel(a_ref, w_ref, b_ref, r_ref, o_ref, *, relu):
    acc = jnp.dot(a_ref[...], w_ref[...], preferred_element_type=jnp.float32)
    acc = acc + b_ref[...] + r_ref[...].astype(jnp.float32)
    if relu:
        acc = jnp.maximum(acc, 0.0)
    o_ref[...] = acc.astype(o_ref.dtype)


def gemm_bias_act(a, w, b, *, relu, residual=None):
    """a: (G, M, K) bf16; w: (G, K, N) bf16 (BN folded, pre-packed, N%128==0);
    b: (G, 1, N) f32; residual: optional (G, M, N) bf16.
    Returns (G, M, N) bf16 = [relu](a @ w + b [+ residual])."""
    g, m, k = a.shape
    g2, k2, n = w.shape
    assert g == g2 and k == k2 and n % 128 == 0, (a.shape, w.shape)

    # ---- M tiling (rows only; K is a single full-extent block) ----
    m_pad = _round_up(max(m, 8), 8)
    tm = m_pad if m_pad <= 512 else 512
    m_pad = _round_up(m_pad, tm)
    if m_pad != m:
        a = jnp.pad(a, ((0, 0), (0, m_pad - m), (0, 0)))
        if residual is not None:
            residual = jnp.pad(residual, ((0, 0), (0, m_pad - m), (0, 0)))
    m_grid = m_pad // tm

    # ---- N tiling: prefer 256-wide, but guarantee >=2 parallel grid steps
    #      whenever possible so v7x's second TensorCore has work ----
    tn = 256 if n % 256 == 0 else 128
    if g * m_grid * (n // tn) < 2 and (n // 128) >= 2:
        tn = 128
    n_grid = n // tn
    if g * m_grid * n_grid == 1 and m_pad % 16 == 0 and m_pad >= 16:
        tm = m_pad // 2
        m_grid = 2

    grid = (g, m_grid, n_grid)

    # Real double-buffered tile footprint (+ margin) -- stays well under v7x 64 MiB.
    tile_bytes = (tm * k * 2 + k * tn * 2 + tn * 4 + tm * tn * 2
                  + (tm * tn * 2 if residual is not None else 0))
    vmem_limit = int(min(48 * 1024 * 1024, 2 * tile_bytes + (4 << 20)))

    bytes_acc = g * (m_pad * k * 2 + k * n * 2 + m_pad * n * 2 + n * 4
                     + (m_pad * n * 2 if residual is not None else 0))
    cost = pl.CostEstimate(flops=2 * g * m_pad * k * n, transcendentals=0,
                           bytes_accessed=bytes_acc)

    in_specs = [
        pl.BlockSpec((None, tm, k), lambda gi, i, j: (gi, i, 0)),   # activations / patches
        pl.BlockSpec((None, k, tn), lambda gi, i, j: (gi, 0, j)),   # pre-packed weight
        pl.BlockSpec((None, 1, tn), lambda gi, i, j: (gi, 0, j)),   # BN shift / bias
    ]
    operands = [a, w, b]
    if residual is not None:
        in_specs.append(pl.BlockSpec((None, tm, tn), lambda gi, i, j: (gi, i, j)))
        operands.append(residual)
        kernel = functools.partial(_gemm_res_kernel, relu=relu)
    else:
        kernel = functools.partial(_gemm_kernel, relu=relu)

    out = pl.pallas_call(
        kernel,
        out_shape=jax.ShapeDtypeStruct((g, m_pad, n), jnp.bfloat16),
        grid_spec=pltpu.PrefetchScalarGridSpec(
            num_scalar_prefetch=0,
            grid=grid,
            in_specs=in_specs,
            out_specs=pl.BlockSpec((None, tm, tn), lambda gi, i, j: (gi, i, j)),
        ),
        compiler_params=pltpu.CompilerParams(
            dimension_semantics=("parallel", "parallel", "parallel"),
            vmem_limit_bytes=vmem_limit),
        cost_estimate=cost,
    )(*operands)

    if m_pad != m:
        out = out[:, :m, :]
    return out


# ----------------------------------------------------------------------------
# Conv wrappers (im2col in bf16; 1x1 convs skip im2col entirely).
# ----------------------------------------------------------------------------
def _im2col_nhwc(x, kh, kw, stride, padding, dilation=1):
    b, h, w, c = x.shape
    xp = jnp.pad(x, ((0, 0), (padding, padding), (padding, padding), (0, 0)))
    ho = (h + 2 * padding - dilation * (kh - 1) - 1) // stride + 1
    wo = (w + 2 * padding - dilation * (kw - 1) - 1) // stride + 1
    cols = []
    for i in range(kh):
        for j in range(kw):
            di, dj = i * dilation, j * dilation
            cols.append(
                xp[:, di:di + stride * ho:stride, dj:dj + stride * wo:stride, :])
    p = jnp.stack(cols, axis=3)                       # (B, Ho, Wo, KH*KW, C)
    return p.reshape(b, ho * wo, kh * kw * c), ho, wo


def conv_nhwc(x, pw, *, ksize, stride, padding, relu, residual=None):
    """x: (N,H,W,C_pad) bf16. pw: {'w': (K,Np) bf16, 'b': (1,Np) f32}. NHWC bf16 out."""
    n, h, w, c = x.shape
    if ksize == 1:
        assert stride == 1 and padding == 0
        patches = x.reshape(n * h * w, c)
        ho, wo = h, w
    else:
        p3, ho, wo = _im2col_nhwc(x, ksize, ksize, stride, padding)
        patches = p3.reshape(n * ho * wo, ksize * ksize * c)
    k_dim = pw['w'].shape[0]
    if patches.shape[-1] != k_dim:                    # only the stem conv1 (K=27 -> 128)
        patches = jnp.pad(patches, ((0, 0), (0, k_dim - patches.shape[-1])))
    res2d = None
    if residual is not None:
        res2d = residual.reshape(n * ho * wo, -1)[None]
    out = gemm_bias_act(patches[None], pw['w'][None], pw['b'][None],
                        relu=relu, residual=res2d)
    return out[0].reshape(n, ho, wo, -1)


def conv_nhwc_grouped(xg, pw, *, ksize, stride, padding, relu):
    """Batched independent convs (stage 3x3s): xg (G,N,H,W,C), pw['w'] (G,K,Np)."""
    g, n, h, w, c = xg.shape
    p3, ho, wo = _im2col_nhwc(xg.reshape(g * n, h, w, c), ksize, ksize, stride, padding)
    patches = p3.reshape(g, n * ho * wo, ksize * ksize * c)
    out = gemm_bias_act(patches, pw['w'], pw['b'], relu=relu)
    return out.reshape(g, n, ho, wo, -1)


# ----------------------------------------------------------------------------
# Pooling glue (plain JAX; memory-bound, no MXU benefit).
# ----------------------------------------------------------------------------
def max_pool2d_nhwc(x, kernel, stride, padding):
    neg_inf = jnp.array(-jnp.inf, dtype=x.dtype)
    return jax.lax.reduce_window(
        x, neg_inf, jax.lax.max,
        (1, kernel, kernel, 1), (1, stride, stride, 1),
        ((0, 0), (padding, padding), (padding, padding), (0, 0)))


def avg_pool2d_nhwc(x, kernel, stride, padding):
    # count_include_pad=True (PyTorch default for the Bottle2neck 'stage' pool)
    xf = x.astype(jnp.float32)
    s = jax.lax.reduce_window(
        xf, jnp.float32(0), jax.lax.add,
        (1, kernel, kernel, 1), (1, stride, stride, 1),
        ((0, 0), (padding, padding), (padding, padding), (0, 0)))
    return (s / float(kernel * kernel)).astype(x.dtype)


def avg_pool2d_ceil_nopad(x, kernel, stride):
    # AvgPool2d(kernel_size=stride, stride=stride, ceil_mode=True,
    #           count_include_pad=False)  -- downsample branch.
    if kernel == 1 and stride == 1:
        return x
    n, h, w, c = x.shape
    xf = x.astype(jnp.float32)
    h_out = -((h - kernel) // -stride) + 1
    w_out = -((w - kernel) // -stride) + 1
    ph = max(0, (h_out - 1) * stride + kernel - h)
    pw_ = max(0, (w_out - 1) * stride + kernel - w)
    xs = jnp.pad(xf, ((0, 0), (0, ph), (0, pw_), (0, 0)))
    ones = jnp.pad(jnp.ones((1, h, w, 1), jnp.float32),
                   ((0, 0), (0, ph), (0, pw_), (0, 0)))
    ssum = jax.lax.reduce_window(xs, jnp.float32(0), jax.lax.add,
                                 (1, kernel, kernel, 1), (1, stride, stride, 1), 'VALID')
    cnt = jax.lax.reduce_window(ones, jnp.float32(0), jax.lax.add,
                                (1, kernel, kernel, 1), (1, stride, stride, 1), 'VALID')
    return (ssum / cnt).astype(x.dtype)


# ----------------------------------------------------------------------------
# Parameter construction (PyTorch-style init) and ONE-TIME packing.
# ----------------------------------------------------------------------------
_EXPANSION = 4


def _conv_bn_params(key, c_in, c_out, k):
    kw_, kg, kb, km, kv = jax.random.split(key, 5)
    fan_out = c_out * k * k
    w = jax.random.normal(kw_, (c_out, c_in, k, k), jnp.float32) * math.sqrt(2.0 / fan_out)
    gamma = 1.0 + 0.05 * jax.random.normal(kg, (c_out,), jnp.float32)
    beta = 0.05 * jax.random.normal(kb, (c_out,), jnp.float32)
    mean = 0.05 * jax.random.normal(km, (c_out,), jnp.float32)
    var = 1.0 + 0.1 * jnp.abs(jax.random.normal(kv, (c_out,), jnp.float32))
    return {'w': w, 'gamma': gamma, 'beta': beta, 'mean': mean, 'var': var}


def _fc_params(key, c_in, c_out):
    kw_, kb = jax.random.split(key)
    bound = 1.0 / math.sqrt(c_in)
    w = jax.random.uniform(kw_, (c_out, c_in), jnp.float32, -bound, bound)
    b = jax.random.uniform(kb, (c_out,), jnp.float32, -bound, bound)
    return {'w': w, 'b': b}


def build_res2net(key, layers=(1, 1, 1, 1), baseWidth=26, scale=4, num_classes=10):
    """cfg = static python config (ints/strings only), params = raw arrays."""
    keys = iter(jax.random.split(key, 256))
    cfg = {'scale': scale, 'num_classes': num_classes, 'layers': []}
    params = {'stem': [], 'layers': [], 'fc': None}
    for (ci, co) in [(3, 32), (32, 32), (32, 64)]:          # conv1 Sequential (+ bn1 fused)
        params['stem'].append(_conv_bn_params(next(keys), ci, co, 3))
    inplanes = 64
    for planes, blocks, stride in [(64, layers[0], 1), (128, layers[1], 2),
                                   (256, layers[2], 2), (512, layers[3], 2)]:
        lcfg, lprm = [], []
        for bi in range(blocks):
            s = stride if bi == 0 else 1
            stype = 'stage' if bi == 0 else 'normal'
            need_ds = bi == 0 and (stride != 1 or inplanes != planes * _EXPANSION)
            width = int(math.floor(planes * (baseWidth / 64.0)))
            nums = 1 if scale == 1 else scale - 1
            bcfg = {'width': width, 'scale': scale, 'stype': stype, 'stride': s,
                    'nums': nums, 'has_ds': need_ds, 'ds_pool': s,
                    'gw': _round_up(width, 128)}            # lane-aligned group width
            bprm = {'conv1': _conv_bn_params(next(keys), inplanes, width * scale, 1),
                    'convs': [_conv_bn_params(next(keys), width, width, 3)
                              for _ in range(nums)],
                    'conv3': _conv_bn_params(next(keys), width * scale,
                                             planes * _EXPANSION, 1)}
            if need_ds:
                bprm['downsample'] = _conv_bn_params(next(keys), inplanes,
                                                     planes * _EXPANSION, 1)
            lcfg.append(bcfg)
            lprm.append(bprm)
            inplanes = planes * _EXPANSION
        cfg['layers'].append(lcfg)
        params['layers'].append(lprm)
    params['fc'] = _fc_params(next(keys), 512 * _EXPANSION, num_classes)
    return cfg, params


def _fold_pack_conv(p, in_index, in_dim, out_index, out_dim, eps=1e-5):
    """Fold BN into the conv weight and scatter it into the padded channel layout.
    Returns {'w': (K, out_dim) bf16, 'b': (1, out_dim) f32} with K a 128-multiple."""
    w = p['w'].astype(jnp.float32)                           # (Cout, Cin, KH, KW)
    c_out, c_in, kh, kw = w.shape
    inv_std = jax.lax.rsqrt(p['var'].astype(jnp.float32) + eps)
    scale = p['gamma'].astype(jnp.float32) * inv_std
    shift = p['beta'].astype(jnp.float32) - p['mean'].astype(jnp.float32) * scale
    wt = jnp.transpose(w, (2, 3, 1, 0)) * scale[None, None, None, :]   # (KH,KW,Cin,Cout)
    w_in = jnp.zeros((kh, kw, in_dim, c_out), jnp.float32).at[:, :, in_index, :].set(wt)
    w_full = jnp.zeros((kh, kw, in_dim, out_dim), jnp.float32).at[:, :, :, out_index].set(w_in)
    k_total = kh * kw * in_dim
    w_mat = w_full.reshape(k_total, out_dim)
    k_pad = _round_up(k_total, 128)
    if k_pad != k_total:
        w_mat = jnp.pad(w_mat, ((0, k_pad - k_total), (0, 0)))
    b_vec = jnp.zeros((out_dim,), jnp.float32).at[out_index].set(shift)
    return {'w': w_mat.astype(jnp.bfloat16), 'b': b_vec.reshape(1, out_dim)}


def prepare_params(cfg, params, eps=1e-5):
    """One-time packing: everything the forward touches is already bf16, transposed,
    BN-folded and channel-padded.  Output pytree contains ONLY arrays."""
    packed = {'stem': [], 'layers': [], 'fc': None}
    in_dim = params['stem'][0]['w'].shape[1]                 # raw image channels (3)
    for p in params['stem']:
        c_out, c_in = p['w'].shape[0], p['w'].shape[1]
        out_dim = _round_up(c_out, 128)
        packed['stem'].append(_fold_pack_conv(p, jnp.arange(c_in), in_dim,
                                              jnp.arange(c_out), out_dim, eps))
        in_dim = out_dim
    for lcfg, lprm in zip(cfg['layers'], params['layers']):
        lpk = []
        for bcfg, bprm in zip(lcfg, lprm):
            width, scale, gw = bcfg['width'], bcfg['scale'], bcfg['gw']
            c_in = bprm['conv1']['w'].shape[1]
            exp_out = bprm['conv3']['w'].shape[0]
            out_dim = _round_up(exp_out, 128)
            grp_idx = jnp.array([g * gw + j for g in range(scale) for j in range(width)],
                                jnp.int32)
            bpk = {'conv1': _fold_pack_conv(bprm['conv1'], jnp.arange(c_in), in_dim,
                                            grp_idx, scale * gw, eps)}
            ws, bs = [], []
            for cp in bprm['convs']:
                pc = _fold_pack_conv(cp, jnp.arange(width), gw, jnp.arange(width), gw, eps)
                ws.append(pc['w'])
                bs.append(pc['b'])
            bpk['convs'] = {'w': jnp.stack(ws, 0), 'b': jnp.stack(bs, 0)}
            bpk['conv3'] = _fold_pack_conv(bprm['conv3'], grp_idx, scale * gw,
                                           jnp.arange(exp_out), out_dim, eps)
            if 'downsample' in bprm:
                bpk['downsample'] = _fold_pack_conv(bprm['downsample'], jnp.arange(c_in),
                                                    in_dim, jnp.arange(exp_out), out_dim, eps)
            lpk.append(bpk)
            in_dim = out_dim
        packed['layers'].append(lpk)
    fc = params['fc']
    n_cls, c_fc = fc['w'].shape
    n_pad = _round_up(n_cls, 128)
    w_fc = jnp.zeros((in_dim, n_pad), jnp.float32).at[:c_fc, :n_cls].set(fc['w'].T)
    b_fc = jnp.zeros((1, n_pad), jnp.float32).at[0, :n_cls].set(fc['b'])
    packed['fc'] = {'w': w_fc.astype(jnp.bfloat16), 'b': b_fc}
    return packed


# ----------------------------------------------------------------------------
# Forward pass.
# ----------------------------------------------------------------------------
def bottle2neck_forward(x, bcfg, bpk):
    scale, stype = bcfg['scale'], bcfg['stype']
    stride, nums, gw = bcfg['stride'], bcfg['nums'], bcfg['gw']

    # Residual branch (needed by the fused conv3 epilogue).
    if bcfg['has_ds']:
        r = avg_pool2d_ceil_nopad(x, bcfg['ds_pool'], bcfg['ds_pool'])
        r = conv_nhwc(r, bpk['downsample'], ksize=1, stride=1, padding=0, relu=False)
    else:
        r = x

    out = conv_nhwc(x, bpk['conv1'], ksize=1, stride=1, padding=0, relu=True)
    spx = [out[..., g * gw:(g + 1) * gw] for g in range(scale)]   # lane-aligned groups

    if stype == 'stage':
        # Independent inputs -> ONE batched GEMM over the group axis.
        xg = jnp.stack(spx[:nums], axis=0)                        # (nums, N, H, W, gw)
        yg = conv_nhwc_grouped(xg, bpk['convs'], ksize=3, stride=stride, padding=1,
                               relu=True)
        pieces = [yg[i] for i in range(nums)]
    else:
        pieces, sp = [], None
        for i in range(nums):
            sp = spx[i] if i == 0 else sp + spx[i]
            pw_i = {'w': bpk['convs']['w'][i], 'b': bpk['convs']['b'][i]}
            sp = conv_nhwc(sp, pw_i, ksize=3, stride=stride, padding=1, relu=True)
            pieces.append(sp)
    if scale != 1:
        if stype == 'normal':
            pieces.append(spx[nums])
        else:                                                     # 'stage'
            pieces.append(avg_pool2d_nhwc(spx[nums], 3, stride, 1))
    cat = jnp.concatenate(pieces, axis=-1)
    # conv3 + BN + residual add + final ReLU, all in the GEMM epilogue.
    return conv_nhwc(cat, bpk['conv3'], ksize=1, stride=1, padding=0, relu=True,
                     residual=r)


def res2net_forward(x_nchw, cfg, packed):
    x = jnp.transpose(x_nchw, (0, 2, 3, 1)).astype(jnp.bfloat16)  # single NCHW->NHWC, bf16
    for pw, s in zip(packed['stem'], (2, 1, 1)):                  # conv/bn/relu x3 (bn1 fused)
        x = conv_nhwc(x, pw, ksize=3, stride=s, padding=1, relu=True)
    x = max_pool2d_nhwc(x, 3, 2, 1)
    for lcfg, lpk in zip(cfg['layers'], packed['layers']):
        for bcfg, bpk in zip(lcfg, lpk):
            x = bottle2neck_forward(x, bcfg, bpk)
    feat = jnp.mean(x.astype(jnp.float32), axis=(1, 2)).astype(jnp.bfloat16)
    logits = gemm_bias_act(feat[None], packed['fc']['w'][None], packed['fc']['b'][None],
                           relu=False)[0]
    return logits[:, :cfg['num_classes']].astype(jnp.float32)


# ----------------------------------------------------------------------------
if __name__ == "__main__":
    key = jax.random.PRNGKey(0)
    k1, k2, k3, k4 = jax.random.split(key, 4)

    # ---- unit check: packed conv+BN+ReLU kernel vs XLA reference ------------
    cp = _conv_bn_params(k1, 3, 32, 3)
    pw_test = _fold_pack_conv(cp, jnp.arange(3), 3, jnp.arange(32), 128)
    x_nhwc = jax.random.normal(k2, (2, 16, 16, 3), jnp.float32)
    xb = x_nhwc.astype(jnp.bfloat16)
    conv_fn = jax.jit(lambda xx: conv_nhwc(xx, pw_test, ksize=3, stride=2, padding=1,
                                           relu=True))
    out = jax.block_until_ready(conv_fn(xb))                      # (2, 8, 8, 128) bf16
    xf = xb.astype(jnp.float32)
    ref = jax.lax.conv_general_dilated(
        jnp.transpose(xf, (0, 3, 1, 2)), cp['w'], (2, 2), ((1, 1), (1, 1)),
        dimension_numbers=("NCHW", "OIHW", "NCHW"))
    inv = jax.lax.rsqrt(cp['var'] + 1e-5)
    ref = (ref - cp['mean'][None, :, None, None]) * (cp['gamma'] * inv)[None, :, None, None] \
          + cp['beta'][None, :, None, None]
    ref = jnp.transpose(jnp.maximum(ref, 0.0), (0, 2, 3, 1))      # (2, 8, 8, 32)
    out32 = out[..., :32].astype(jnp.float32)
    assert out32.shape == ref.shape, (out32.shape, ref.shape)
    max_err = float(jnp.max(jnp.abs(out32 - ref)))
    assert max_err < 5e-2, max_err                                # bf16 MXU, f32 accumulation
    pad_err = float(jnp.max(jnp.abs(out[..., 32:].astype(jnp.float32))))
    assert pad_err == 0.0, pad_err                                # padded lanes stay zero

    # ---- full Res2Net forward (layers=[1,1,1,1], 2x3x32x32 input) -----------
    cfg, params = build_res2net(k3, layers=(1, 1, 1, 1), baseWidth=26, scale=4,
                                num_classes=10)
    packed = prepare_params(cfg, params)                          # one-time weight packing
    x = jax.random.normal(k4, (2, 3, 32, 32), jnp.float32)
    fwd = jax.jit(lambda xx, pp: res2net_forward(xx, cfg, pp))
    logits = jax.block_until_ready(fwd(x, packed))
    assert logits.shape == (2, 10), logits.shape
    assert bool(jnp.all(jnp.isfinite(logits)))
    print("KERNEL_OK")
</pallas_src>

<mosaic_0001>
module attributes {stable_mosaic.version = 11 : i64} {
  func.func @_gemm_kernel(%arg0: i32, %arg1: i32, %arg2: i32, %arg3: memref<1x64x128xbf16, #tpu.memory_space<vmem>>, %arg4: memref<1x128x128xbf16, #tpu.memory_space<vmem>>, %arg5: memref<1x1x128xf32, #tpu.memory_space<vmem>>, %arg6: memref<1x64x128xbf16, #tpu.memory_space<vmem>>) attributes {dimension_semantics = [#tpu.dimension_semantics<parallel>, #tpu.dimension_semantics<parallel>, #tpu.dimension_semantics<parallel>], iteration_bounds = array<i64: 1, 2, 1>, scalar_prefetch = 0 : i64, scratch_operands = 0 : i64, tpu.core_type = #tpu.core_type<tc>, window_params = [{transform_indices = @transform_0, window_bounds = array<i64: 1, 64, 128>}, {transform_indices = @transform_1, window_bounds = array<i64: 1, 128, 128>}, {transform_indices = @transform_2, window_bounds = array<i64: 1, 1, 128>}, {transform_indices = @transform_3, window_bounds = array<i64: 1, 64, 128>}]} {
    %c0 = arith.constant 0 : index
    %c0_0 = arith.constant 0 : index
    %c0_1 = arith.constant 0 : index
    %0 = vector.load %arg3[%c0, %c0_0, %c0_1] : memref<1x64x128xbf16, #tpu.memory_space<vmem>>, vector<1x64x128xbf16>
    %1 = vector.shape_cast %0 : vector<1x64x128xbf16> to vector<64x128xbf16>
    %c0_2 = arith.constant 0 : index
    %c0_3 = arith.constant 0 : index
    %c0_4 = arith.constant 0 : index
    %2 = vector.load %arg4[%c0_2, %c0_3, %c0_4] : memref<1x128x128xbf16, #tpu.memory_space<vmem>>, vector<1x128x128xbf16>
    %3 = vector.shape_cast %2 : vector<1x128x128xbf16> to vector<128x128xbf16>
    %cst = arith.constant dense<0.000000e+00> : vector<64x128xf32>
    %4 = tpu.matmul %1, %3, %cst {dimension_numbers = #tpu.dot_dimension_numbers<[1], [0], [0], [1], [0, 0, 1, 1], [], []>} : vector<64x128xbf16>, vector<128x128xbf16>, vector<64x128xf32> -> vector<64x128xf32>
    %c0_5 = arith.constant 0 : index
    %c0_6 = arith.constant 0 : index
    %c0_7 = arith.constant 0 : index
    %5 = vector.load %arg5[%c0_5, %c0_6, %c0_7] : memref<1x1x128xf32, #tpu.memory_space<vmem>>, vector<1x1x128xf32>
    %6 = vector.shape_cast %5 : vector<1x1x128xf32> to vector<1x128xf32>
    %7 = vector.broadcast %6 : vector<1x128xf32> to vector<64x128xf32>
    %8 = arith.addf %4, %7 : vector<64x128xf32>
    %cst_8 = arith.constant 0.000000e+00 : f32
    %9 = vector.broadcast %cst_8 : f32 to vector<64x128xf32>
    %10 = arith.maximumf %8, %9 : vector<64x128xf32>
    %11 = arith.truncf %10 : vector<64x128xf32> to vector<64x128xbf16>
    %c0_9 = arith.constant 0 : index
    %c0_10 = arith.constant 0 : index
    %c0_11 = arith.constant 0 : index
    %12 = vector.load %arg6[%c0_9, %c0_10, %c0_11] : memref<1x64x128xbf16, #tpu.memory_space<vmem>>, vector<1x64x128xbf16>
    %13 = vector.shape_cast %12 : vector<1x64x128xbf16> to vector<64x128xbf16>
    %14 = vector.shape_cast %11 : vector<64x128xbf16> to vector<1x64x128xbf16>
    tpu.vector_store %arg6[%c0_9, %c0_10, %c0_11], %14 {strides = array<i32>} : memref<1x64x128xbf16, #tpu.memory_space<vmem>>, vector<1x64x128xbf16>,
    return
  }
  func.func @transform_0(%arg0: i32, %arg1: i32, %arg2: i32) -> (i32, i32, i32) {
    %c0_i32 = arith.constant 0 : i32
    %c0_i32_0 = arith.constant 0 : i32
    return %arg0, %arg1, %c0_i32 : i32, i32, i32
  }
  func.func @transform_1(%arg0: i32, %arg1: i32, %arg2: i32) -> (i32, i32, i32) {
    %c0_i32 = arith.constant 0 : i32
    %c0_i32_0 = arith.constant 0 : i32
    return %arg0, %c0_i32, %arg2 : i32, i32, i32
  }
  func.func @transform_2(%arg0: i32, %arg1: i32, %arg2: i32) -> (i32, i32, i32) {
    %c0_i32 = arith.constant 0 : i32
    %c0_i32_0 = arith.constant 0 : i32
    return %arg0, %c0_i32, %arg2 : i32, i32, i32
  }
  func.func @transform_3(%arg0: i32, %arg1: i32, %arg2: i32) -> (i32, i32, i32) {
    %c0_i32 = arith.constant 0 : i32
    return %arg0, %arg1, %arg2 : i32, i32, i32
  }
}

</mosaic_0001>

<bundles_post_ra>
// kernel: _lambda_.1
= control target key start
LH: loop header
LB: loop body
LE: loop exit
PB: predicated region body
PF: predicated region fallthrough
CT: control target
= control target key end

     0   :  { %8 = vsyncpa [#allocation3], 0  ;;  %s1061_s0 = inlined_call_operand.vmem [shape: bf16[1,128,128], index: 0, kind: input, shape index: {}]   ;;  %s1062_s1 = inlined_call_operand.vmem [shape: bf16[1,128,128], index: 1, kind: input, shape index: {}]   ;;  %s1063_s2 = inlined_call_operand.vmem [shape: f32[1,1,128], index: 2, kind: input, shape index: {}]   ;;  %s1064_s3 = inlined_call_operand.hbm [shape: bf16[1,128,128], index: 3, kind: output, shape index: {}]  }
   0x1   :  { %10 = vsyncpa [#allocation3 + $0x1], 0  ;;  %s910_s12 = smov 0   ;;  %s912_s13 = smov 0  }
   0x2   :  { %s914_s14 = smov 0   ;;  %s916_s15 = smov 0  }
   0x3   :  { %s918_s16 = smov 0   ;;  %s920_s17 = smov 0  }
   0x4 LB: > { %s618_s18 = sadd.s32 4294967295, %s885_s17   ;;  %s619_s19 = sadd.s32 4294967294, %s885_s17   ;;  %s885_s17 = sphi %s920_s17, %s16_s17   ;;  %s881_s16 = sphi %s918_s16, %s1071_s16   ;;  %s877_s15 = sphi %s916_s15, %s1070_s15   ;;  %s873_s14 = sphi %s914_s14, %s1069_s14   ;;  %s869_s13 = sphi %s912_s13, %s1068_s13   ;;  %s865_s12 = sphi %s910_s12, %s1067_s12  }
   0x5   : > { %s31_s20 = sadd.s32 1, %s881_s16  ;;  %s130_s21 = sadd.s32 1, %s873_s14 }
   0x6   : > { %p33_p0 = scmp.ge.s32.totalorder %s31_s20, 2  ;;  %p140_p1 = scmp.ne.s32.totalorder %s873_s14, %s869_s13 }
   0x7   : > { %p141_p2 = scmp.eq.s32.totalorder %s618_s18, 1  ;;  %p146_p3 = scmp.ne.s32.totalorder %s869_s13, %s865_s12 }
   0x8   : > { %s1073_s20 = smov (%p33_p0, %s31_s20), 0  ;;  %p147_p5 = scmp.eq.s32.totalorder %s619_s19, 1 }
   0x9   : > { %p950_p4 = por %p141_p2, %p140_p1  ;;  %s124_s23 = ssub.s32 %s881_s16, %s1073_s20 }
   0xa   : > { %p624_p6 = scmp.ge.s32.totalorder %s885_s17, 1  ;;  %p128_p7 = scmp.eq.s32.totalorder %s124_s23, 0 }
   0xb   : > { %p957_p8 = por %p147_p5, %p146_p3  ;;  %p198_p9 = scmp.lt.s32.totalorder %s885_s17, 3 }
   0xc   : > { %s963_s25 = scalar_select %p128_p7, %s873_s14, %s130_s21  }
   0xd   : > { %p199_p10 = pnand %p624_p6, %p198_p9 }
   0xe   : > { %v795_v0 = vld [vmem:[%s1062_s1] sm:$0xff] (!%p199_p10)   ;;  %s626_s28 = sshll.u32 (!%p199_p10), %s877_s15, 3  ;;  %v796_v1 = vld [vmem:[%s1062_s1 + $0x8] sm:$0xff] (!%p199_p10)   ;;  %v797_v2 = vld [vmem:[%s1062_s1 + $0x10] sm:$0xff] (!%p199_p10)   ;;  %s237_s30 = sand.u32 (!%p199_p10), 1, %s869_s13  }
   0xf   : > { %202 = sbr.rel (%p199_p10) target bundleno = 283 (0x11b), region = 32  ;;  %p243_p11 = scmp.lt.s32.totalorder (!%p199_p10), %s626_s28, 15  ;;  %698 = vmatprep.subr.bf16.mxu0 (!%p199_p10), %v795_v0  ;;  %722 = vmatprep.subr.bf16.mxu1 (!%p199_p10), %v795_v0  ;;  %v798_v3 = vld [vmem:[%s1062_s1 + $0x18] sm:$0xff] (!%p199_p10)   ;;  %v799_v6 = vld [vmem:[%s1062_s1 + $0x20] sm:$0xff] (!%p199_p10)   ;;  %v800_v7 = vld [vmem:[%s1062_s1 + $0x28] sm:$0xff] (!%p199_p10)  }
  0x10   : > { %699 = vmatpush3.bf16.msra.mxu0 (!%p199_p10), %v795_v0  ;;  %730 = vmatpush3.bf16.msra.mxu1 (!%p199_p10), %v795_v0  ;;  %v801_v8 = vld [vmem:[%s1062_s1 + $0x30] sm:$0xff] (!%p199_p10)   ;;  %v802_v9 = vld [vmem:[%s1062_s1 + $0x38] sm:$0xff] (!%p199_p10)   ;;  %v628_v12 = vld [vmem:[%s1063_s2] ss:$0 sm:$0xff] (!%p199_p10)  ;;  %s1015_s18 = scalar_lea.sflag (!%p199_p10), [#allocation3], %s237_s30  ;;  %s887_s21 = smov (!%p199_p10), [#allocation2]  }
  0x11   : > { %700 = vmatprep.subr.bf16.mxu0 (!%p199_p10), %v796_v1  ;;  %723 = vmatprep.subr.bf16.mxu1 (!%p199_p10), %v796_v1  ;;  %s811_s23 = sshll.u32 (!%p199_p10), %s887_s21, 4  ;;  %s812_s23 = int_to_ptr.vmem [resolvable:$false] %s811_s23 }
  0x12   : > { %s813_s26 = scalar_lea.vmem (!%p199_p10), %s812_s23, 1024 }
  0x14   : > { %701 = vmatpush3.bf16.msra.mxu0 (!%p199_p10), %v796_v1  ;;  %731 = vmatpush3.bf16.msra.mxu1 (!%p199_p10), %v796_v1 }
  0x15   : > { %702 = vmatprep.subr.bf16.mxu0 (!%p199_p10), %v797_v2  ;;  %724 = vmatprep.subr.bf16.mxu1 (!%p199_p10), %v797_v2 }
  0x16   : > { %s1075_s28 = smov (!%p243_p11, %s626_s28), 15 }
  0x17   : > { %s627_s6 = sshll.u32 %s1075_s28, 2 }
  0x18   : > { %s978_s9 = scalar_lea.vmem %s1061_s0, %s627_s6  ;;  %703 = vmatpush3.bf16.msra.mxu0 %v797_v2  ;;  %732 = vmatpush3.bf16.msra.mxu1 %v797_v2  ;;  %s625_s6 = sshll.u32 %s237_s30, 5 }
  0x19   : > { %v803_v4 = vld [vmem:[%s978_s9] sm:$0xff]   ;;  %v804_v5 = vld [vmem:[%s978_s9 + $0x10] sm:$0xff]   ;;  %704 = vmatprep.subr.bf16.mxu0 %v798_v3  ;;  %725 = vmatprep.subr.bf16.mxu1 %v798_v3  ;;  %v805_v10 = vld [vmem:[%s978_s9 + $0x8] sm:$0xff]   ;;  %s239_s7 = scalar_lea.vmem [#allocation2], %s625_s6 }
  0x1a   : > { %714 = vmatprep.mubr.bf16.mxu0 %v803_v4  ;;  %718 = vmatprep.mubr.bf16.mxu1 %v804_v5  ;;  %v806_v11 = vld [vmem:[%s978_s9 + $0x18] sm:$0xff]   ;;  %s499_s8 = sshll.u32 %s239_s7, 4  ;;  %s662_s9 = sshll.u32 %s877_s15, 9  ;;  %s1006_s8 = int_to_ptr.vmem [resolvable:$true] %s499_s8 }
  0x1b   : > { %s1011_s15 = scalar_lea.hbm %s1064_s3, %s662_s9  ;;  %s807_s19 = scalar_lea.vmem %s1006_s8, 512 }
  0x1c   : > { %705 = vmatpush3.bf16.msra.mxu0 %v798_v3  ;;  %733 = vmatpush3.bf16.msra.mxu1 %v798_v3  ;;  %p808_p12 = scmp.ne.s32.totalorder %s1006_s8, %s807_s19  ;;  %p814_p1 = scmp.lt.s32.totalorder %s1006_s8, %s812_s23 }
  0x1d   : > { %706 = vmatprep.subr.bf16.mxu0 %v799_v6  ;;  %726 = vmatprep.subr.bf16.mxu1 %v799_v6  ;;  %p815_p2 = scmp.lt.s32.totalorder %s813_s26, %s807_s19 }
  0x1e   : > { %p809_p13 = pnand %p808_p12, %p950_p4 }
  0x1f   : > { %p816_p3 = por %p815_p2, %p814_p1 }
  0x20   : > { %707 = vmatpush3.bf16.msra.mxu0 %v799_v6  ;;  %734 = vmatpush3.bf16.msra.mxu1 %v799_v6  ;;  %p810_p0 = pneg %p809_p13 }
  0x21   : > { %708 = vmatprep.subr.bf16.mxu0 %v800_v7  ;;  %727 = vmatprep.subr.bf16.mxu1 %v800_v7 }
  0x22   : > { %p817_p5 = pnand %p816_p3, %p810_p0 }
  0x24   : > { %709 = vmatpush3.bf16.msra.mxu0 %v800_v7  ;;  %735 = vmatpush3.bf16.msra.mxu1 %v800_v7 }
  0x25   : > { %710 = vmatprep.subr.bf16.mxu0 %v801_v8  ;;  %728 = vmatprep.subr.bf16.mxu1 %v801_v8 }
  0x28   : > { %711 = vmatpush3.bf16.msra.mxu0 %v801_v8  ;;  %736 = vmatpush3.bf16.msra.mxu1 %v801_v8 }
  0x29   : > { %712 = vmatprep.subr.bf16.mxu0 %v802_v9  ;;  %729 = vmatprep.subr.bf16.mxu1 %v802_v9 }
  0x2c   : > { %713 = vmatpush3.bf16.msra.mxu0 %v802_v9  ;;  %737 = vmatpush3.bf16.msra.mxu1 %v802_v9 }
  0x2f   : > { %715 = vmatmul.mubr.bf16.vlgmr.msra.gmra.mrb[0].mxu0 %v805_v10  ;;  %719 = vmatmul.mubr.bf16.vlgmr.msra.gmra.mrb[0].mxu1 %v806_v11 }
 0x102   : > { %v716_v13 = vpop.f32.mrb[0].mxu0  ;;  %v720_v14 = vpop.f32.mrb[0].mxu1 }
 0x103   : > { %v412_v15 = vadd.f32 %v716_v13, %v628_v12  ;;  %v428_v16 = vadd.f32 %v720_v14, %v628_v12  ;;  %v403_v17 = vpop.f32.mrb[1].mxu0  ;;  %v419_v18 = vpop.f32.mrb[1].mxu1 }
 0x104   : > { %v404_v19 = vadd.f32 %v628_v12, %v403_v17  ;;  %v420_v20 = vadd.f32 %v628_v12, %v419_v18  ;;  %v717_v21 = vpop.f32.mrb[2].mxu0  ;;  %v721_v22 = vpop.f32.mrb[2].mxu1 }
 0x105   : > { %v415_v23 = vadd.f32 %v717_v21, %v628_v12  ;;  %v431_v24 = vadd.f32 %v721_v22, %v628_v12  ;;  %v406_v25 = vpop.f32.mrb[3].mxu0  ;;  %v422_v26 = vpop.f32.mrb[3].mxu1  ;;  %v436_v29 = vmax.f32 %v412_v15, 0.0  ;;  %v440_v30 = vmax.f32 %v428_v16, 0.0 }
 0x106   : > { %v407_v27 = vadd.f32 %v628_v12, %v406_v25  ;;  %v423_v28 = vadd.f32 %v628_v12, %v422_v26  ;;  %v434_v33 = vmax.f32 %v404_v19, 0.0  ;;  %v438_v34 = vmax.f32 %v420_v20, 0.0 }
 0x107   : > { %v437_v31 = vmax.f32 %v415_v23, 0.0  ;;  %v441_v32 = vmax.f32 %v431_v24, 0.0 }
 0x108   : > { %v435_v35 = vmax.f32 %v407_v27, 0.0  ;;  %v439_v36 = vmax.f32 %v423_v28, 0.0 }
 0x109   : > { %v671_v37 = vpack.c.bf16 %v437_v31, %v436_v29  ;;  %v681_v38 = vpack.c.bf16 %v441_v32, %v440_v30 }
 0x10a   : > { %v666_v39 = vpack.c.bf16 %v435_v35, %v434_v33  ;;  %v676_v40 = vpack.c.bf16 %v439_v36, %v438_v34 }
 0x10b   : > { %683 = vst [vmem:[%s239_s7 + $0x8] sm:$0xff] %v671_v37   ;;  %685 = vst [vmem:[%s239_s7 + $0x18] sm:$0xff] %v681_v38  }
 0x10c   : > { %667 = vst [vmem:[%s239_s7] sm:$0xff] %v666_v39   ;;  %684 = vst [vmem:[%s239_s7 + $0x10] sm:$0xff] %v676_v40  }
 0x10d   : > { %820 = shalt.err (!%p817_p5)
}
 0x10e   : > { %s821_s27 = scalar_lea.hbm %s1011_s15, 512  ;;  %s825_s30 = scalar_lea.hbm %s1064_s3, 1024 }
 0x10f   : > { %p822_p6 = scmp.ne.s32.totalorder %s1011_s15, %s821_s27  ;;  %p826_p10 = scmp.lt.u32.totalorder %s1011_s15, %s1064_s3 }
 0x110   : > { %p827_p11 = scmp.lt.u32.totalorder %s825_s30, %s821_s27  ;;  %p829_p13 = scmp.lt.u32.totalorder %s821_s27, %s1011_s15 }
 0x111   : > { %p823_p7 = pnand %p822_p6, %p950_p4 }
 0x112   : > { %p828_p12 = por %p827_p11, %p826_p10 }
 0x113   : > { %p824_p9 = pneg %p823_p7 }
 0x114   : > { %p830_p0 = por %p829_p13, %p828_p12 }
 0x116   : > { %p831_p1 = pnand %p830_p0, %p824_p9 }
 0x118   : > { %834 = shalt.err (!%p831_p1)
}
 0x119   : > { %s888_s6 = smov 64   ;;  %s889_s7 = smov 4  }
 0x11a   : > { %738 = dma.vmem_to_hbm [thread:$0]  (%p950_p4), %s1006_s8, 512, %s1011_s15, %s1015_s18, %s888_s6, %s888_s6, %s889_s7  }
 0x11b PF: > { %p744_p2 = scmp.ge.s32.totalorder %s885_s17, 2  ;;  %s514_s9 = sand.u32 1, %s865_s12  }
 0x11c   : > { %s515_s10 = scalar_lea.sflag [#allocation3], %s514_s9 }
 0x11d   : > { %p741_p3 = pnand %p744_p2, %p957_p8 }
 0x11f   : > { %860 = dma.done.wait (!%p741_p3), %s515_s10, 512  }
 0x120   : > { %862 = vsyncadd (!%p741_p3), %s515_s10, 4294966784  ;;  %s16_s17 = sadd.s32 1, %s885_s17   ;;  %s1067_s12 = smov %s869_s13 }
 0x121   : > { %p13_p5 = scmp.ge.s32.totalorder %s16_s17, 4   ;;  %s1068_s13 = smov %s873_s14 }
 0x122   : > { %s1069_s14 = smov %s963_s25  ;;  %s1070_s15 = smov %s881_s16 }
 0x123   : > { %s1071_s16 = smov %s1073_s20  ;;  %15 = sbr.rel (!%p13_p5) target bundleno = 4 (0x4), region = 73 }
 0x12a   :  { %520 = vsyncpa [#allocation3], 1 }
 0x12b   :  { %522 = vsyncpa [#allocation3 + $0x1], 1 }

</bundles_post_ra>
